<compile_context>
chip_gen: v5e
topology: v5e:2x2
jax: 0.10.0
libtpu: 0.0.40
codegen_flags: <defaults>
</compile_context>

<pallas_src>
import functools

import jax
import jax.numpy as jnp
import numpy as np
from jax.experimental import pallas as pl
from jax.experimental.pallas import tpu as pltpu

EPS = 1e-5


def conv_block_kernel(inv_count, patches_ref, w1_ref, g1_ref, be1_ref,
                      w2_ref, g2_ref, be2_ref, o_ref, stats_ref):
    """Fused conv3x3 -> BN -> ReLU -> conv1x1 -> BN -> ReLU.

    grid = (3 sweeps, P tiles). stats_ref rows: [sum1, sumsq1, sum2, sumsq2].
    """
    s = pl.program_id(0)   # sweep: 0 = conv1 stats, 1 = conv2 stats, 2 = apply
    t = pl.program_id(1)   # tile over flattened N*OH*OW rows

    @pl.when(jnp.logical_and(s == 0, t == 0))
    def _init_stats():
        stats_ref[...] = jnp.zeros_like(stats_ref)

    def conv1():
        # bf16 x bf16 -> f32 accumulate on the MXU (single pass).
        return jnp.dot(patches_ref[...], w1_ref[...],
                       preferred_element_type=jnp.float32)

    def conv2(a1_f32):
        return jnp.dot(a1_f32.astype(jnp.bfloat16), w2_ref[...],
                       preferred_element_type=jnp.float32)

    def accum_stats(y, slot):
        # Single-pass statistics: per-channel sum and sum-of-squares.
        stats_ref[slot:slot + 1, :] += jnp.sum(y, axis=0, keepdims=True)
        stats_ref[slot + 1:slot + 2, :] += jnp.sum(y * y, axis=0, keepdims=True)

    def bn_relu(y, slot, g_ref, be_ref):
        # Training-mode BatchNorm from accumulated global stats, then ReLU.
        mean = stats_ref[slot:slot + 1, :] * inv_count
        var = stats_ref[slot + 1:slot + 2, :] * inv_count - mean * mean
        scale = g_ref[...] * jax.lax.rsqrt(var + EPS)
        shift = be_ref[...] - mean * scale
        return jnp.maximum(y * scale + shift, 0.0)

    @pl.when(s == 0)            # sweep 0: stats of conv3x3 output
    def _sweep0():
        accum_stats(conv1(), 0)

    @pl.when(s == 1)            # sweep 1: BN1+ReLU, conv1x1, its stats
    def _sweep1():
        a1 = bn_relu(conv1(), 0, g1_ref, be1_ref)
        accum_stats(conv2(a1), 2)

    @pl.when(s == 2)            # sweep 2: full chain, write final output
    def _sweep2():
        a1 = bn_relu(conv1(), 0, g1_ref, be1_ref)
        y2 = conv2(a1)
        o_ref[...] = bn_relu(y2, 2, g2_ref, be2_ref)


def _im2col_3x3_s2_p1(x_nhwc, oh, ow):
    """Extract 3x3, stride-2, pad-1 patches -> (N*OH*OW, 9*Cin)."""
    n, _, _, cin = x_nhwc.shape
    xp = jnp.pad(x_nhwc, ((0, 0), (1, 1), (1, 1), (0, 0)))
    cols = []
    for kh in range(3):
        for kw in range(3):
            sl = jax.lax.slice(
                xp,
                (0, kh, kw, 0),
                (n, kh + 2 * (oh - 1) + 1, kw + 2 * (ow - 1) + 1, cin),
                (1, 2, 2, 1),
            )  # (N, OH, OW, Cin)
            cols.append(sl)
    patches = jnp.concatenate(cols, axis=-1)            # (N, OH, OW, 9*Cin)
    return patches.reshape(n * oh * ow, 9 * cin)


def _round_up(x, m):
    return (x + m - 1) // m * m


def _pick_tile_p(p_total, target):
    """Largest divisor of P that is <= target and a multiple of 8, else P."""
    t_max = min(target, p_total)
    for cand in range(t_max, 7, -1):
        if cand % 8 == 0 and p_total % cand == 0:
            return cand
    return p_total


@functools.partial(jax.jit, static_argnames=("tile_p",))
def conv_block_wo_maxpooling(x_nchw, w1, b1, g1, be1, w2, b2, g2, be2, *,
                             tile_p=512):
    # Conv biases cancel exactly under training-mode BN mean subtraction.
    del b1, b2

    n, cin, h, w = x_nchw.shape
    cout = w1.shape[0]
    oh = (h + 2 - 3) // 2 + 1
    ow = (w + 2 - 3) // 2 + 1
    P = n * oh * ow
    K = 9 * cin
    cpad = _round_up(cout, 128)     # lane-dense channel axis

    # NCHW -> NHWC (bf16), im2col patches streamed to the kernel in tiles.
    x_nhwc = jnp.transpose(x_nchw, (0, 2, 3, 1)).astype(jnp.bfloat16)
    patches = _im2col_3x3_s2_p1(x_nhwc, oh, ow)          # (P, K) bf16

    # PyTorch conv weights (Cout, Cin, KH, KW) -> matmul layout, zero-padded
    # to cpad output channels (padded channels stay exactly 0 end-to-end
    # because gamma/beta are padded with 0 as well).
    w1_flat = jnp.transpose(w1, (2, 3, 1, 0)).reshape(K, cout)
    w1_p = jnp.zeros((K, cpad), jnp.bfloat16).at[:, :cout].set(
        w1_flat.astype(jnp.bfloat16))
    w2_flat = jnp.transpose(w2[:, :, 0, 0], (1, 0))      # (Cin2=Cout, Cout)
    w2_p = jnp.zeros((cpad, cpad), jnp.bfloat16).at[:cout, :cout].set(
        w2_flat.astype(jnp.bfloat16))

    def row(v):  # (cout,) -> lane-dense, zero-padded (1, cpad) f32
        return jnp.zeros((1, cpad), jnp.float32).at[0, :cout].set(
            v.astype(jnp.float32))

    TILE_P = _pick_tile_p(P, tile_p)
    n_tiles = P // TILE_P

    kern = functools.partial(conv_block_kernel, 1.0 / float(P))
    resident = lambda shape: pl.BlockSpec(shape, lambda s, t: (0, 0))

    out_flat = pl.pallas_call(
        kern,
        out_shape=jax.ShapeDtypeStruct((P, cpad), jnp.float32),
        grid=(3, n_tiles),
        in_specs=[
            pl.BlockSpec((TILE_P, K), lambda s, t: (t, 0)),   # streamed patches
            resident((K, cpad)),                               # w1 (resident)
            resident((1, cpad)), resident((1, cpad)),          # gamma1, beta1
            resident((cpad, cpad)),                            # w2 (resident)
            resident((1, cpad)), resident((1, cpad)),          # gamma2, beta2
        ],
        # Output block index only advances in the final sweep -> each output
        # block is DMA'd back to HBM exactly once.
        out_specs=pl.BlockSpec((TILE_P, cpad),
                               lambda s, t: (jnp.where(s == 2, t, 0), 0)),
        scratch_shapes=[pltpu.VMEM((4, cpad), jnp.float32)],   # sum/sumsq x2
        compiler_params=pltpu.CompilerParams(
            dimension_semantics=("arbitrary", "arbitrary")),
    )(patches, w1_p, row(g1), row(be1), w2_p, row(g2), row(be2))

    out = out_flat[:, :cout].reshape(n, oh, ow, cout)
    return jnp.transpose(out, (0, 3, 1, 2))   # back to NCHW


def reference_forward(x, w1, b1, g1, be1, w2, b2, g2, be2):
    """Pure-JAX reference matching PyTorch training-mode forward (f32)."""
    dn = ("NCHW", "OIHW", "NCHW")

    def bn_relu(y, g, be):
        mean = y.mean(axis=(0, 2, 3), keepdims=True)
        var = ((y - mean) ** 2).mean(axis=(0, 2, 3), keepdims=True)
        y = (y - mean) / jnp.sqrt(var + EPS)
        y = y * g[None, :, None, None] + be[None, :, None, None]
        return jnp.maximum(y, 0.0)

    y = jax.lax.conv_general_dilated(
        x, w1, window_strides=(2, 2), padding=((1, 1), (1, 1)),
        dimension_numbers=dn, precision=jax.lax.Precision.HIGHEST)
    y = y + b1[None, :, None, None]
    y = bn_relu(y, g1, be1)
    y = jax.lax.conv_general_dilated(
        y, w2, window_strides=(1, 1), padding="VALID",
        dimension_numbers=dn, precision=jax.lax.Precision.HIGHEST)
    y = y + b2[None, :, None, None]
    return bn_relu(y, g2, be2)


if __name__ == "__main__":
    # Small deterministic problem: batch=2, in_c=4, out_c=8, spatial=16.
    N, IN_C, OUT_C, H, W = 2, 4, 8, 16, 16
    key = jax.random.PRNGKey(0)
    ks = jax.random.split(key, 8)

    x = jax.random.normal(ks[0], (N, IN_C, H, W), jnp.float32)
    w1 = 0.1 * jax.random.normal(ks[1], (OUT_C, IN_C, 3, 3), jnp.float32)
    b1 = 0.1 * jax.random.normal(ks[2], (OUT_C,), jnp.float32)
    g1 = 1.0 + 0.1 * jax.random.normal(ks[3], (OUT_C,), jnp.float32)
    be1 = 0.1 * jax.random.normal(ks[4], (OUT_C,), jnp.float32)
    w2 = 0.1 * jax.random.normal(ks[5], (OUT_C, OUT_C, 1, 1), jnp.float32)
    b2 = 0.1 * jax.random.normal(ks[6], (OUT_C,), jnp.float32)
    g2 = 1.0 + 0.1 * jax.random.normal(ks[7], (OUT_C,), jnp.float32)
    be2 = 0.1 * jax.random.normal(jax.random.fold_in(key, 99), (OUT_C,),
                                  jnp.float32)

    # tile_p=32 -> 4 tiles x 3 sweeps: exercises streaming + stat accumulation.
    out = conv_block_wo_maxpooling(x, w1, b1, g1, be1, w2, b2, g2, be2,
                                   tile_p=32)
    out = jax.block_until_ready(out)

    ref = reference_forward(x, w1, b1, g1, be1, w2, b2, g2, be2)
    ref = jax.block_until_ready(ref)

    assert out.shape == (N, OUT_C, H // 2, W // 2), out.shape
    # bf16 MXU operands (f32 accumulate) vs an f32 HIGHEST reference: BN
    # renormalizes, so errors stay at the few-1e-3 level; 5e-2 is comfortable.
    np.testing.assert_allclose(np.asarray(out), np.asarray(ref),
                               atol=5e-2, rtol=5e-2)
    print("KERNEL_OK")
</pallas_src>

<mosaic_0001>
module attributes {stable_mosaic.version = 11 : i64} {
  func.func @conv_block_kernel(%arg0: i32, %arg1: i32, %arg2: memref<32x36xbf16, #tpu.memory_space<vmem>>, %arg3: memref<36x128xbf16, #tpu.memory_space<vmem>>, %arg4: memref<1x128xf32, #tpu.memory_space<vmem>>, %arg5: memref<1x128xf32, #tpu.memory_space<vmem>>, %arg6: memref<128x128xbf16, #tpu.memory_space<vmem>>, %arg7: memref<1x128xf32, #tpu.memory_space<vmem>>, %arg8: memref<1x128xf32, #tpu.memory_space<vmem>>, %arg9: memref<32x128xf32, #tpu.memory_space<vmem>>, %arg10: memref<4x128xf32, #tpu.memory_space<vmem>>) attributes {dimension_semantics = [#tpu.dimension_semantics<arbitrary>, #tpu.dimension_semantics<arbitrary>], iteration_bounds = array<i64: 3, 4>, scalar_prefetch = 0 : i64, scratch_operands = 1 : i64, tpu.core_type = #tpu.core_type<tc>, window_params = [{transform_indices = @transform_0, window_bounds = array<i64: 32, 36>}, {pipeline_mode = #tpu.pipeline_mode<synchronous>, transform_indices = @transform_1, window_bounds = array<i64: 36, 128>}, {pipeline_mode = #tpu.pipeline_mode<synchronous>, transform_indices = @transform_2, window_bounds = array<i64: 1, 128>}, {pipeline_mode = #tpu.pipeline_mode<synchronous>, transform_indices = @transform_3, window_bounds = array<i64: 1, 128>}, {pipeline_mode = #tpu.pipeline_mode<synchronous>, transform_indices = @transform_4, window_bounds = array<i64: 128, 128>}, {pipeline_mode = #tpu.pipeline_mode<synchronous>, transform_indices = @transform_5, window_bounds = array<i64: 1, 128>}, {pipeline_mode = #tpu.pipeline_mode<synchronous>, transform_indices = @transform_6, window_bounds = array<i64: 1, 128>}, {transform_indices = @transform_7, window_bounds = array<i64: 32, 128>}]} {
    %c0_i32 = arith.constant 0 : i32
    %0 = arith.cmpi eq, %arg0, %c0_i32 : i32
    %c0_i32_0 = arith.constant 0 : i32
    %1 = arith.cmpi eq, %arg1, %c0_i32_0 : i32
    %2 = arith.andi %0, %1 : i1
    %3 = arith.extui %2 : i1 to i32
    %c0_i32_1 = arith.constant 0 : i32
    %4 = arith.cmpi ne, %3, %c0_i32_1 : i32
    scf.if %4 {
      %cst = arith.constant 0.000000e+00 : f32
      %14 = vector.broadcast %cst : f32 to vector<4x128xf32>
      %c0 = arith.constant 0 : index
      %c0_6 = arith.constant 0 : index
      %15 = vector.load %arg10[%c0, %c0_6] : memref<4x128xf32, #tpu.memory_space<vmem>>, vector<4x128xf32>
      tpu.vector_store %arg10[%c0, %c0_6], %14 {strides = array<i32>} : memref<4x128xf32, #tpu.memory_space<vmem>>, vector<4x128xf32>,
    } else {
    }
    %c0_i32_2 = arith.constant 0 : i32
    %5 = arith.cmpi eq, %arg0, %c0_i32_2 : i32
    %6 = arith.extui %5 : i1 to i32
    %c0_i32_3 = arith.constant 0 : i32
    %7 = arith.cmpi ne, %6, %c0_i32_3 : i32
    scf.if %7 {
      %c0 = arith.constant 0 : index
      %c0_6 = arith.constant 0 : index
      %14 = vector.load %arg2[%c0, %c0_6] : memref<32x36xbf16, #tpu.memory_space<vmem>>, vector<32x36xbf16>
      %c0_7 = arith.constant 0 : index
      %c0_8 = arith.constant 0 : index
      %15 = vector.load %arg3[%c0_7, %c0_8] : memref<36x128xbf16, #tpu.memory_space<vmem>>, vector<36x128xbf16>
      %cst = arith.constant dense<0.000000e+00> : vector<32x128xf32>
      %16 = tpu.matmul %14, %15, %cst {dimension_numbers = #tpu.dot_dimension_numbers<[1], [0], [0], [1], [0, 0, 1, 1], [], []>} : vector<32x36xbf16>, vector<36x128xbf16>, vector<32x128xf32> -> vector<32x128xf32>
      %c0_9 = arith.constant 0 : index
      %c0_10 = arith.constant 0 : index
      %17 = vector.load %arg10[%c0_9, %c0_10] : memref<4x128xf32, #tpu.memory_space<vmem>>, vector<1x128xf32>
      %cst_11 = arith.constant dense<0.000000e+00> : vector<128xf32>
      %18 = vector.multi_reduction <add>, %16, %cst_11 [0] : vector<32x128xf32> to vector<128xf32>
      %19 = vector.shape_cast %18 : vector<128xf32> to vector<1x128xf32>
      %20 = arith.addf %17, %19 : vector<1x128xf32>
      %c0_12 = arith.constant 0 : index
      %c0_13 = arith.constant 0 : index
      %21 = vector.load %arg10[%c0_12, %c0_13] : memref<4x128xf32, #tpu.memory_space<vmem>>, vector<1x128xf32>
      tpu.vector_store %arg10[%c0_12, %c0_13], %20 {strides = array<i32>} : memref<4x128xf32, #tpu.memory_space<vmem>>, vector<1x128xf32>,
      %c1 = arith.constant 1 : index
      %c0_14 = arith.constant 0 : index
      %22 = vector.load %arg10[%c1, %c0_14] : memref<4x128xf32, #tpu.memory_space<vmem>>, vector<1x128xf32>
      %23 = arith.mulf %16, %16 : vector<32x128xf32>
      %cst_15 = arith.constant dense<0.000000e+00> : vector<128xf32>
      %24 = vector.multi_reduction <add>, %23, %cst_15 [0] : vector<32x128xf32> to vector<128xf32>
      %25 = vector.shape_cast %24 : vector<128xf32> to vector<1x128xf32>
      %26 = arith.addf %22, %25 : vector<1x128xf32>
      %c1_16 = arith.constant 1 : index
      %c0_17 = arith.constant 0 : index
      %27 = vector.load %arg10[%c1_16, %c0_17] : memref<4x128xf32, #tpu.memory_space<vmem>>, vector<1x128xf32>
      tpu.vector_store %arg10[%c1_16, %c0_17], %26 {strides = array<i32>} : memref<4x128xf32, #tpu.memory_space<vmem>>, vector<1x128xf32>,
    } else {
    }
    %c1_i32 = arith.constant 1 : i32
    %8 = arith.cmpi eq, %arg0, %c1_i32 : i32
    %9 = arith.extui %8 : i1 to i32
    %c0_i32_4 = arith.constant 0 : i32
    %10 = arith.cmpi ne, %9, %c0_i32_4 : i32
    scf.if %10 {
      %c0 = arith.constant 0 : index
      %c0_6 = arith.constant 0 : index
      %14 = vector.load %arg2[%c0, %c0_6] : memref<32x36xbf16, #tpu.memory_space<vmem>>, vector<32x36xbf16>
      %c0_7 = arith.constant 0 : index
      %c0_8 = arith.constant 0 : index
      %15 = vector.load %arg3[%c0_7, %c0_8] : memref<36x128xbf16, #tpu.memory_space<vmem>>, vector<36x128xbf16>
      %cst = arith.constant dense<0.000000e+00> : vector<32x128xf32>
      %16 = tpu.matmul %14, %15, %cst {dimension_numbers = #tpu.dot_dimension_numbers<[1], [0], [0], [1], [0, 0, 1, 1], [], []>} : vector<32x36xbf16>, vector<36x128xbf16>, vector<32x128xf32> -> vector<32x128xf32>
      %c0_9 = arith.constant 0 : index
      %c0_10 = arith.constant 0 : index
      %17 = vector.load %arg10[%c0_9, %c0_10] : memref<4x128xf32, #tpu.memory_space<vmem>>, vector<1x128xf32>
      %cst_11 = arith.constant 7.812500e-03 : f32
      %18 = vector.broadcast %cst_11 : f32 to vector<1x128xf32>
      %19 = arith.mulf %17, %18 : vector<1x128xf32>
      %c1 = arith.constant 1 : index
      %c0_12 = arith.constant 0 : index
      %20 = vector.load %arg10[%c1, %c0_12] : memref<4x128xf32, #tpu.memory_space<vmem>>, vector<1x128xf32>
      %cst_13 = arith.constant 7.812500e-03 : f32
      %21 = vector.broadcast %cst_13 : f32 to vector<1x128xf32>
      %22 = arith.mulf %20, %21 : vector<1x128xf32>
      %23 = arith.mulf %19, %19 : vector<1x128xf32>
      %24 = arith.subf %22, %23 : vector<1x128xf32>
      %c0_14 = arith.constant 0 : index
      %c0_15 = arith.constant 0 : index
      %25 = vector.load %arg4[%c0_14, %c0_15] : memref<1x128xf32, #tpu.memory_space<vmem>>, vector<1x128xf32>
      %cst_16 = arith.constant 9.99999974E-6 : f32
      %26 = vector.broadcast %cst_16 : f32 to vector<1x128xf32>
      %27 = arith.addf %24, %26 : vector<1x128xf32>
      %28 = math.rsqrt %27 : vector<1x128xf32>
      %29 = arith.mulf %25, %28 : vector<1x128xf32>
      %c0_17 = arith.constant 0 : index
      %c0_18 = arith.constant 0 : index
      %30 = vector.load %arg5[%c0_17, %c0_18] : memref<1x128xf32, #tpu.memory_space<vmem>>, vector<1x128xf32>
      %31 = arith.mulf %19, %29 : vector<1x128xf32>
      %32 = arith.subf %30, %31 : vector<1x128xf32>
      %33 = vector.broadcast %29 : vector<1x128xf32> to vector<32x128xf32>
      %34 = arith.mulf %16, %33 : vector<32x128xf32>
      %35 = vector.broadcast %32 : vector<1x128xf32> to vector<32x128xf32>
      %36 = arith.addf %34, %35 : vector<32x128xf32>
      %cst_19 = arith.constant 0.000000e+00 : f32
      %37 = vector.broadcast %cst_19 : f32 to vector<32x128xf32>
      %38 = arith.maximumf %36, %37 : vector<32x128xf32>
      %39 = arith.truncf %38 : vector<32x128xf32> to vector<32x128xbf16>
      %c0_20 = arith.constant 0 : index
      %c0_21 = arith.constant 0 : index
      %40 = vector.load %arg6[%c0_20, %c0_21] : memref<128x128xbf16, #tpu.memory_space<vmem>>, vector<128x128xbf16>
      %cst_22 = arith.constant dense<0.000000e+00> : vector<32x128xf32>
      %41 = tpu.matmul %39, %40, %cst_22 {dimension_numbers = #tpu.dot_dimension_numbers<[1], [0], [0], [1], [0, 0, 1, 1], [], []>} : vector<32x128xbf16>, vector<128x128xbf16>, vector<32x128xf32> -> vector<32x128xf32>
      %c2 = arith.constant 2 : index
      %c0_23 = arith.constant 0 : index
      %42 = vector.load %arg10[%c2, %c0_23] : memref<4x128xf32, #tpu.memory_space<vmem>>, vector<1x128xf32>
      %cst_24 = arith.constant dense<0.000000e+00> : vector<128xf32>
      %43 = vector.multi_reduction <add>, %41, %cst_24 [0] : vector<32x128xf32> to vector<128xf32>
      %44 = vector.shape_cast %43 : vector<128xf32> to vector<1x128xf32>
      %45 = arith.addf %42, %44 : vector<1x128xf32>
      %c2_25 = arith.constant 2 : index
      %c0_26 = arith.constant 0 : index
      %46 = vector.load %arg10[%c2_25, %c0_26] : memref<4x128xf32, #tpu.memory_space<vmem>>, vector<1x128xf32>
      tpu.vector_store %arg10[%c2_25, %c0_26], %45 {strides = array<i32>} : memref<4x128xf32, #tpu.memory_space<vmem>>, vector<1x128xf32>,
      %c3 = arith.constant 3 : index
      %c0_27 = arith.constant 0 : index
      %47 = vector.load %arg10[%c3, %c0_27] : memref<4x128xf32, #tpu.memory_space<vmem>>, vector<1x128xf32>
      %48 = arith.mulf %41, %41 : vector<32x128xf32>
      %cst_28 = arith.constant dense<0.000000e+00> : vector<128xf32>
      %49 = vector.multi_reduction <add>, %48, %cst_28 [0] : vector<32x128xf32> to vector<128xf32>
      %50 = vector.shape_cast %49 : vector<128xf32> to vector<1x128xf32>
      %51 = arith.addf %47, %50 : vector<1x128xf32>
      %c3_29 = arith.constant 3 : index
      %c0_30 = arith.constant 0 : index
      %52 = vector.load %arg10[%c3_29, %c0_30] : memref<4x128xf32, #tpu.memory_space<vmem>>, vector<1x128xf32>
      tpu.vector_store %arg10[%c3_29, %c0_30], %51 {strides = array<i32>} : memref<4x128xf32, #tpu.memory_space<vmem>>, vector<1x128xf32>,
    } else {
    }
    %c2_i32 = arith.constant 2 : i32
    %11 = arith.cmpi eq, %arg0, %c2_i32 : i32
    %12 = arith.extui %11 : i1 to i32
    %c0_i32_5 = arith.constant 0 : i32
    %13 = arith.cmpi ne, %12, %c0_i32_5 : i32
    scf.if %13 {
      %c0 = arith.constant 0 : index
      %c0_6 = arith.constant 0 : index
      %14 = vector.load %arg2[%c0, %c0_6] : memref<32x36xbf16, #tpu.memory_space<vmem>>, vector<32x36xbf16>
      %c0_7 = arith.constant 0 : index
      %c0_8 = arith.constant 0 : index
      %15 = vector.load %arg3[%c0_7, %c0_8] : memref<36x128xbf16, #tpu.memory_space<vmem>>, vector<36x128xbf16>
      %cst = arith.constant dense<0.000000e+00> : vector<32x128xf32>
      %16 = tpu.matmul %14, %15, %cst {dimension_numbers = #tpu.dot_dimension_numbers<[1], [0], [0], [1], [0, 0, 1, 1], [], []>} : vector<32x36xbf16>, vector<36x128xbf16>, vector<32x128xf32> -> vector<32x128xf32>
      %c0_9 = arith.constant 0 : index
      %c0_10 = arith.constant 0 : index
      %17 = vector.load %arg10[%c0_9, %c0_10] : memref<4x128xf32, #tpu.memory_space<vmem>>, vector<1x128xf32>
      %cst_11 = arith.constant 7.812500e-03 : f32
      %18 = vector.broadcast %cst_11 : f32 to vector<1x128xf32>
      %19 = arith.mulf %17, %18 : vector<1x128xf32>
      %c1 = arith.constant 1 : index
      %c0_12 = arith.constant 0 : index
      %20 = vector.load %arg10[%c1, %c0_12] : memref<4x128xf32, #tpu.memory_space<vmem>>, vector<1x128xf32>
      %cst_13 = arith.constant 7.812500e-03 : f32
      %21 = vector.broadcast %cst_13 : f32 to vector<1x128xf32>
      %22 = arith.mulf %20, %21 : vector<1x128xf32>
      %23 = arith.mulf %19, %19 : vector<1x128xf32>
      %24 = arith.subf %22, %23 : vector<1x128xf32>
      %c0_14 = arith.constant 0 : index
      %c0_15 = arith.constant 0 : index
      %25 = vector.load %arg4[%c0_14, %c0_15] : memref<1x128xf32, #tpu.memory_space<vmem>>, vector<1x128xf32>
      %cst_16 = arith.constant 9.99999974E-6 : f32
      %26 = vector.broadcast %cst_16 : f32 to vector<1x128xf32>
      %27 = arith.addf %24, %26 : vector<1x128xf32>
      %28 = math.rsqrt %27 : vector<1x128xf32>
      %29 = arith.mulf %25, %28 : vector<1x128xf32>
      %c0_17 = arith.constant 0 : index
      %c0_18 = arith.constant 0 : index
      %30 = vector.load %arg5[%c0_17, %c0_18] : memref<1x128xf32, #tpu.memory_space<vmem>>, vector<1x128xf32>
      %31 = arith.mulf %19, %29 : vector<1x128xf32>
      %32 = arith.subf %30, %31 : vector<1x128xf32>
      %33 = vector.broadcast %29 : vector<1x128xf32> to vector<32x128xf32>
      %34 = arith.mulf %16, %33 : vector<32x128xf32>
      %35 = vector.broadcast %32 : vector<1x128xf32> to vector<32x128xf32>
      %36 = arith.addf %34, %35 : vector<32x128xf32>
      %cst_19 = arith.constant 0.000000e+00 : f32
      %37 = vector.broadcast %cst_19 : f32 to vector<32x128xf32>
      %38 = arith.maximumf %36, %37 : vector<32x128xf32>
      %39 = arith.truncf %38 : vector<32x128xf32> to vector<32x128xbf16>
      %c0_20 = arith.constant 0 : index
      %c0_21 = arith.constant 0 : index
      %40 = vector.load %arg6[%c0_20, %c0_21] : memref<128x128xbf16, #tpu.memory_space<vmem>>, vector<128x128xbf16>
      %cst_22 = arith.constant dense<0.000000e+00> : vector<32x128xf32>
      %41 = tpu.matmul %39, %40, %cst_22 {dimension_numbers = #tpu.dot_dimension_numbers<[1], [0], [0], [1], [0, 0, 1, 1], [], []>} : vector<32x128xbf16>, vector<128x128xbf16>, vector<32x128xf32> -> vector<32x128xf32>
      %c2 = arith.constant 2 : index
      %c0_23 = arith.constant 0 : index
      %42 = vector.load %arg10[%c2, %c0_23] : memref<4x128xf32, #tpu.memory_space<vmem>>, vector<1x128xf32>
      %cst_24 = arith.constant 7.812500e-03 : f32
      %43 = vector.broadcast %cst_24 : f32 to vector<1x128xf32>
      %44 = arith.mulf %42, %43 : vector<1x128xf32>
      %c3 = arith.constant 3 : index
      %c0_25 = arith.constant 0 : index
      %45 = vector.load %arg10[%c3, %c0_25] : memref<4x128xf32, #tpu.memory_space<vmem>>, vector<1x128xf32>
      %cst_26 = arith.constant 7.812500e-03 : f32
      %46 = vector.broadcast %cst_26 : f32 to vector<1x128xf32>
      %47 = arith.mulf %45, %46 : vector<1x128xf32>
      %48 = arith.mulf %44, %44 : vector<1x128xf32>
      %49 = arith.subf %47, %48 : vector<1x128xf32>
      %c0_27 = arith.constant 0 : index
      %c0_28 = arith.constant 0 : index
      %50 = vector.load %arg7[%c0_27, %c0_28] : memref<1x128xf32, #tpu.memory_space<vmem>>, vector<1x128xf32>
      %cst_29 = arith.constant 9.99999974E-6 : f32
      %51 = vector.broadcast %cst_29 : f32 to vector<1x128xf32>
      %52 = arith.addf %49, %51 : vector<1x128xf32>
      %53 = math.rsqrt %52 : vector<1x128xf32>
      %54 = arith.mulf %50, %53 : vector<1x128xf32>
      %c0_30 = arith.constant 0 : index
      %c0_31 = arith.constant 0 : index
      %55 = vector.load %arg8[%c0_30, %c0_31] : memref<1x128xf32, #tpu.memory_space<vmem>>, vector<1x128xf32>
      %56 = arith.mulf %44, %54 : vector<1x128xf32>
      %57 = arith.subf %55, %56 : vector<1x128xf32>
      %58 = vector.broadcast %54 : vector<1x128xf32> to vector<32x128xf32>
      %59 = arith.mulf %41, %58 : vector<32x128xf32>
      %60 = vector.broadcast %57 : vector<1x128xf32> to vector<32x128xf32>
      %61 = arith.addf %59, %60 : vector<32x128xf32>
      %cst_32 = arith.constant 0.000000e+00 : f32
      %62 = vector.broadcast %cst_32 : f32 to vector<32x128xf32>
      %63 = arith.maximumf %61, %62 : vector<32x128xf32>
      %c0_33 = arith.constant 0 : index
      %c0_34 = arith.constant 0 : index
      %64 = vector.load %arg9[%c0_33, %c0_34] : memref<32x128xf32, #tpu.memory_space<vmem>>, vector<32x128xf32>
      tpu.vector_store %arg9[%c0_33, %c0_34], %63 {strides = array<i32>} : memref<32x128xf32, #tpu.memory_space<vmem>>, vector<32x128xf32>,
    } else {
    }
    return
  }
  func.func @transform_0(%arg0: i32, %arg1: i32) -> (i32, i32) {
    %c0_i32 = arith.constant 0 : i32
    %c0_i32_0 = arith.constant 0 : i32
    return %arg1, %c0_i32 : i32, i32
  }
  func.func @transform_1(%arg0: i32, %arg1: i32) -> (i32, i32) {
    %c0_i32 = arith.constant 0 : i32
    %c0_i32_0 = arith.constant 0 : i32
    %c0_i32_1 = arith.constant 0 : i32
    return %c0_i32, %c0_i32_0 : i32, i32
  }
  func.func @transform_2(%arg0: i32, %arg1: i32) -> (i32, i32) {
    %c0_i32 = arith.constant 0 : i32
    %c0_i32_0 = arith.constant 0 : i32
    %c0_i32_1 = arith.constant 0 : i32
    return %c0_i32, %c0_i32_0 : i32, i32
  }
  func.func @transform_3(%arg0: i32, %arg1: i32) -> (i32, i32) {
    %c0_i32 = arith.constant 0 : i32
    %c0_i32_0 = arith.constant 0 : i32
    %c0_i32_1 = arith.constant 0 : i32
    return %c0_i32, %c0_i32_0 : i32, i32
  }
  func.func @transform_4(%arg0: i32, %arg1: i32) -> (i32, i32) {
    %c0_i32 = arith.constant 0 : i32
    %c0_i32_0 = arith.constant 0 : i32
    %c0_i32_1 = arith.constant 0 : i32
    return %c0_i32, %c0_i32_0 : i32, i32
  }
  func.func @transform_5(%arg0: i32, %arg1: i32) -> (i32, i32) {
    %c0_i32 = arith.constant 0 : i32
    %c0_i32_0 = arith.constant 0 : i32
    %c0_i32_1 = arith.constant 0 : i32
    return %c0_i32, %c0_i32_0 : i32, i32
  }
  func.func @transform_6(%arg0: i32, %arg1: i32) -> (i32, i32) {
    %c0_i32 = arith.constant 0 : i32
    %c0_i32_0 = arith.constant 0 : i32
    %c0_i32_1 = arith.constant 0 : i32
    return %c0_i32, %c0_i32_0 : i32, i32
  }
  func.func @transform_7(%arg0: i32, %arg1: i32) -> (i32, i32) {
    %c2_i32 = arith.constant 2 : i32
    %0 = arith.cmpi eq, %arg0, %c2_i32 : i32
    %c0_i32 = arith.constant 0 : i32
    %1 = arith.select %0, %arg1, %c0_i32 : i32
    %c0_i32_0 = arith.constant 0 : i32
    %c0_i32_1 = arith.constant 0 : i32
    return %1, %c0_i32_0 : i32, i32
  }
}

</mosaic_0001>

<bundles_post_ra>
// kernel: conv_block_wo_maxpooling.1
= control target key start
LH: loop header
LB: loop body
LE: loop exit
PB: predicated region body
PF: predicated region fallthrough
CT: control target
= control target key end

     0   :  { %s1246_s24 = smov 0   ;;  %s1248_s25 = smov 0   ;;  %s1411_s0 = inlined_call_operand.vmem [shape: bf16[128,36], index: 0, kind: input, shape index: {}]   ;;  %s1412_s1 = inlined_call_operand.vmem [shape: bf16[36,128], index: 1, kind: input, shape index: {}]   ;;  %s1413_s2 = inlined_call_operand.vmem [shape: f32[1,128], index: 2, kind: input, shape index: {}]   ;;  %s1414_s3 = inlined_call_operand.vmem [shape: f32[1,128], index: 3, kind: input, shape index: {}]   ;;  %s1415_s4 = inlined_call_operand.vmem [shape: bf16[128,128], index: 4, kind: input, shape index: {}]   ;;  %s1416_s5 = inlined_call_operand.vmem [shape: f32[1,128], index: 5, kind: input, shape index: {}]   ;;  %s1417_s6 = inlined_call_operand.vmem [shape: f32[1,128], index: 6, kind: input, shape index: {}]   ;;  %s1418_s7 = inlined_call_operand.vmem [shape: f32[128,128], index: 7, kind: output, shape index: {}]  }
   0x1   :  { %s1250_s26 = smov 0   ;;  %s1252_s27 = smov 0  }
   0x2   :  { %s1254_s28 = smov 0  }
   0x3 LB: > { %s26_s29 = sadd.s32 1, %s1195_s26  ;;  %s29_s30 = sadd.s32 1, %s1199_s27  ;;  %s1203_s28 = sphi %s1254_s28, %s17_s28   ;;  %s1199_s27 = sphi %s1252_s27, %s1422_s27   ;;  %s1195_s26 = sphi %s1250_s26, %s1421_s26   ;;  %s1191_s25 = sphi %s1248_s25, %s1420_s25   ;;  %s1187_s24 = sphi %s1246_s24, %s1419_s24  }
   0x4   : > { %p27_p0 = scmp.ge.s32.totalorder %s26_s29, 4  ;;  %p943_p1 = scmp.ge.s32.totalorder %s1203_s28, 1 }
   0x5   : > { %p254_p2 = scmp.lt.s32.totalorder %s1203_s28, 13 }
   0x6   : > { %s1424_s29 = smov (%p27_p0, %s26_s29), 0  ;;  %s1426_s30 = smov (!%p27_p0, %s29_s30), %s1199_s27 }
   0x7   : > { %p255_p3 = pnand %p943_p1, %p254_p2  ;;  %p31_p4 = scmp.ge.s32.totalorder %s1426_s30, 3 }
   0x8   : > { %s944_s8 = sshll.u32 (!%p255_p3), %s1187_s24, 2  ;;  %p294_p5 = scmp.eq.s32.totalorder (!%p255_p3), %s1191_s25, 2 }
   0x9   : > { %s1428_s30 = smov (%p31_p4, %s1426_s30), 0  ;;  %258 = sbr.rel (%p255_p3) target bundleno = 876 (0x36c), region = 48 }
   0xa   : > { %p289_p6 = scmp.lt.s32.totalorder (!%p255_p3), %s944_s8, 15  ;;  %p305_p7 = scmp.eq.s32.totalorder (!%p255_p3), %s1191_s25, 0 }
   0xb   : > { %p306_p8 = scmp.eq.s32.totalorder (!%p255_p3), %s1187_s24, 0 }
   0xd   : > { %p307_p10 = pnand (!%p255_p3), %p306_p8, %p305_p7 }
   0xe   : > { %s295_s9 = scalar_select %p294_p5, %s1187_s24, 0 }
   0xf   : > { %s1430_s8 = smov (!%p289_p6, %s944_s8), 15 }
  0x10   : > { %s946_s10 = sshll.u32 %s295_s9, 2  ;;  %s945_s11 = sshll.u32 %s1430_s8, 2 }
  0x11   : > { %p297_p9 = scmp.lt.s32.totalorder %s946_s10, 15  ;;  %s1283_s14 = scalar_lea.vmem %s1411_s0, %s945_s11 }
  0x12   : > { %310 = sbr.rel (%p307_p10) target bundleno = 25 (0x19), region = 52 }
  0x13   : > { %s1432_s10 = smov (!%p297_p9, %s946_s10), 15 }
  0x14   : > { %s947_s15 = sshll.u32 %s1432_s10, 3 }
  0x15   : > { %s1288_s18 = scalar_lea.vmem %s1418_s7, %s947_s15 }
  0x17   : > { %v1205_v0 = vmov 0.0  }
  0x18   : > { %311 = vst [vmem:[#allocation2] sm:$0xf] %v1205_v0 }
  0x19 PF: > { %p948_p11 = scmp.ne.s32.totalorder %s1191_s25, 0 }
  0x1b   : > { %314 = sbr.rel (%p948_p11) target bundleno = 206 (0xce), region = 56 }
  0x20   : > { %v323_v1 = vld [vmem:[%s1412_s1 + $0x10] sm:$0x3]  ;;  %vm356_vm0 = vcmask 1041408   ;;  %v1074_v5 = vld [vmem:[%s1412_s1 + $0x8] sm:$0xff]  ;;  %v1073_v6 = vld [vmem:[%s1412_s1] sm:$0xff]  ;;  %vm349_vm1 = vcmask 293888  }
  0x21   : > { %v343_v2 = vunpack.c.l.b16 %v323_v1  ;;  %v1071_v7 = vld [vmem:[%s1283_s14] sm:$0xff]  ;;  %v1072_v8 = vld [vmem:[%s1283_s14 + $0x8] sm:$0xff] }
  0x22   : > { %v379_v32 = vld [vmem:[#allocation2] sm:$0x1]  ;;  %v391_v35 = vld [vmem:[#allocation2 + $0x1] sm:$0x1] }
  0x23   : > { %v346_v3 = vpack.c.b16 %v343_v2, %v343_v2 }
  0x25   : > { %v358_v4 = vsel %vm356_vm0, %v346_v3, 0 }
  0x26   : > { %365 = vmatpush.bf16.msra.mxu0 %v358_v4  ;;  %1099 = vmatpush.bf16.msra.mxu1 %v358_v4 }
  0x2a   : > { %366 = vmatpush.bf16.msra.mxu0 %v1074_v5  ;;  %1100 = vmatpush.bf16.msra.mxu1 %v1074_v5 }
  0x2e   : > { %367 = vmatpush.bf16.msra.mxu0 %v1073_v6  ;;  %1101 = vmatpush.bf16.msra.mxu1 %v1073_v6 }
  0x31   : > { %965 = vmatmul.msk.bf16.vlgmr.msra.gmra.mxu0 %vm349_vm1, %v1071_v7  ;;  %966 = vmatmul.msk.bf16.vlgmr.msra.gmra.mxu1 %vm349_vm1, %v1072_v8 }
  0xae   : > { %v369_v9 = vpop.f32.mrf.mxu0  ;;  %v374_v10 = vpop.f32.mrf.mxu1 }
  0xaf   : > { %v392_v12 = vmul.f32 %v369_v9, %v369_v9  ;;  %v394_v16 = vmul.f32 %v374_v10, %v374_v10 }
  0xb6   : > { %v371_v11 = vpop.f32.mrf.mxu0  ;;  %v376_v15 = vpop.f32.mrf.mxu1 }
  0xb7   : > { %v380_v13 = vadd.f32 %v371_v11, %v369_v9  ;;  %v393_v14 = vmul.f32 %v371_v11, %v371_v11  ;;  %v395_v20 = vmul.f32 %v376_v15, %v376_v15 }
  0xb9   : > { %v396_v17 = vadd.f32 %v393_v14, %v392_v12  ;;  %v381_v18 = vadd.f32 %v380_v13, %v374_v10 }
  0xbb   : > { %v382_v19 = vadd.f32 %v381_v18, %v376_v15  ;;  %v397_v21 = vadd.f32 %v396_v17, %v394_v16 }
  0xbd   : > { %v383_v22 = vrot.slane %v382_v19, 4  ;;  %v398_v23 = vadd.f32 %v397_v21, %v395_v20 }
  0xbf   : > { %v384_v24 = vadd.f32 %v383_v22, %v382_v19  ;;  %v399_v25 = vrot.slane %v398_v23, 4 }
  0xc1   : > { %v385_v26 = vrot.slane %v384_v24, 2  ;;  %v400_v27 = vadd.f32 %v399_v25, %v398_v23 }
  0xc3   : > { %v386_v28 = vadd.f32 %v385_v26, %v384_v24  ;;  %v401_v29 = vrot.slane %v400_v27, 2 }
  0xc5   : > { %v387_v30 = vrot.slane %v386_v28, 1  ;;  %v402_v31 = vadd.f32 %v401_v29, %v400_v27 }
  0xc7   : > { %v388_v33 = vadd.f32 %v387_v30, %v386_v28  ;;  %v403_v34 = vrot.slane %v402_v31, 1 }
  0xc9   : > { %v389_v36 = vadd.f32 %v388_v33, %v379_v32  ;;  %v404_v37 = vadd.f32 %v403_v34, %v402_v31 }
  0xcb   : > { %390 = vst [vmem:[#allocation2] sm:$0x1] %v389_v36  ;;  %v405_v38 = vadd.f32 %v404_v37, %v391_v35 }
  0xcd   : > { %406 = vst [vmem:[#allocation2 + $0x1] sm:$0x1] %v405_v38 }
  0xce PF: > { %p967_p12 = scmp.ne.s32.totalorder %s1191_s25, 1 }
  0xd0   : > { %410 = sbr.rel (%p967_p12) target bundleno = 547 (0x223), region = 60 }
  0xd5   : > { %v419_v39 = vld [vmem:[%s1412_s1 + $0x10] sm:$0x3]  ;;  %v1086_v41 = vld [vmem:[%s1415_s4 + $0x38] sm:$0xff]  ;;  %vm452_vm2 = vcmask 1041408   ;;  %v1078_v45 = vld [vmem:[%s1412_s1 + $0x8] sm:$0xff]  ;;  %vm445_vm3 = vcmask 293888  }
  0xd6   : > { %v439_v40 = vunpack.c.l.b16 %v419_v39  ;;  %581 = vmatpush.bf16.msra.mxu1 %v1086_v41  ;;  %v1085_v43 = vld [vmem:[%s1415_s4 + $0x30] sm:$0xff]  ;;  %1102 = vmatpush.bf16.msra.mxu2 %v1086_v41  ;;  %v1084_v46 = vld [vmem:[%s1415_s4 + $0x28] sm:$0xff]  ;;  %v1077_v47 = vld [vmem:[%s1412_s1] sm:$0xff] }
  0xd7   : > { %v1083_v48 = vld [vmem:[%s1415_s4 + $0x20] sm:$0xff]  ;;  %v1076_v50 = vld [vmem:[%s1283_s14 + $0x8] sm:$0xff]  ;;  %v1082_v59 = vld [vmem:[%s1415_s4 + $0x18] sm:$0xff] }
  0xd8   : > { %v442_v42 = vpack.c.b16 %v439_v40, %v439_v40  ;;  %v1075_v49 = vld [vmem:[%s1283_s14] sm:$0xff]  ;;  %v1081_v61 = vld [vmem:[%s1415_s4 + $0x10] sm:$0xff]  ;;  %v1080_v63 = vld [vmem:[%s1415_s4 + $0x8] sm:$0xff] }
  0xd9   : > { %v475_v51 = vld [vmem:[#allocation2] sm:$0x1]  ;;  %v477_v53 = vld [vmem:[#allocation2 + $0x1] sm:$0x1] }
  0xda   : > { %v454_v44 = vsel %vm452_vm2, %v442_v42, 0  ;;  %582 = vmatpush.bf16.msra.mxu1 %v1085_v43  ;;  %1103 = vmatpush.bf16.msra.mxu2 %v1085_v43  ;;  %v476_v52 = vmul.f32 0.0078125, %v475_v51  ;;  %v478_v54 = vmul.f32 0.0078125, %v477_v53  ;;  %v1079_v1 = vld [vmem:[%s1415_s4] sm:$0xff] }
  0xdb   : > { %461 = vmatpush.bf16.msra.mxu0 %v454_v44  ;;  %v481_v4 = vld [vmem:[%s1413_s2] sm:$0x1]  ;;  %v600_v53 = vld [vmem:[#allocation2 + $0x2] sm:$0x1] }
  0xdc   : > { %v479_v55 = vmul.f32 %v476_v52, %v476_v52  ;;  %v494_v8 = vld [vmem:[%s1414_s3] sm:$0x1] }
  0xde   : > { %583 = vmatpush.bf16.msra.mxu1 %v1084_v46  ;;  %1104 = vmatpush.bf16.msra.mxu2 %v1084_v46  ;;  %v480_v56 = vsub.f32 %v478_v54, %v479_v55 }
  0xdf   : > { %462 = vmatpush.bf16.msra.mxu0 %v1078_v45 }
  0xe0   : > { %v482_v57 = vadd.f32 1e-05, %v480_v56  ;;  %v612_v56 = vld [vmem:[#allocation2 + $0x3] sm:$0x1] }
  0xe2   : > { %584 = vmatpush.bf16.msra.mxu1 %v1083_v48  ;;  %1105 = vmatpush.bf16.msra.mxu2 %v1083_v48  ;;  %1159 = vrsqrt.f32 %v482_v57  ;;  %vm489_vm4 = vweird.f32 %v482_v57 }
  0xe3   : > { %463 = vmatpush.bf16.msra.mxu0 %v1077_v47 }
  0xe6   : > { %984 = vmatmul.msk.bf16.vlgmr.msra.gmra.mxu0 %vm445_vm3, %v1075_v49  ;;  %585 = vmatpush.bf16.msra.mxu1 %v1082_v59 }
  0xe7   : > { %1106 = vmatpush.bf16.msra.mxu2 %v1082_v59 }
  0xe8   : > { %v1160_v58 = vpop.eup %1159 }
  0xe9   : > { %v484_v60 = vmul.f32 %v1160_v58, %v482_v57  ;;  %vm490_vm5 = vweird.f32 %v1160_v58 }
  0xea   : > { %586 = vmatpush.bf16.msra.mxu1 %v1081_v61  ;;  %vm491_vm6 = vmor %vm489_vm4, %vm490_vm5 }
  0xeb   : > { %v485_v62 = vmul.f32 %v1160_v58, %v484_v60  ;;  %1107 = vmatpush.bf16.msra.mxu2 %v1081_v61 }
  0xed   : > { %v486_v0 = vmul.f32 0.5, %v485_v62 }
  0xee   : > { %587 = vmatpush.bf16.msra.mxu1 %v1080_v63 }
  0xef   : > { %1108 = vmatpush.bf16.msra.mxu2 %v1080_v63  ;;  %v487_v2 = vsub.f32 1.5, %v486_v0 }
  0xf1   : > { %v488_v3 = vmul.f32 %v1160_v58, %v487_v2 }
  0xf2   : > { %588 = vmatpush.bf16.msra.mxu1 %v1079_v1 }
  0xf3   : > { %1109 = vmatpush.bf16.msra.mxu2 %v1079_v1  ;;  %v492_v5 = vsel %vm491_vm6, %v1160_v58, %v488_v3 }
  0xf4   : > { %v493_v6 = vmul.f32 %v492_v5, %v481_v4 }
  0xf6   : > { %985 = vmatmul.msk.bf16.gmra.mxu0 %vm445_vm3, %v1076_v50  ;;  %v495_v7 = vmul.f32 %v493_v6, %v476_v52  ;;  %v498_v11 = vperm.slane %v493_v6, 0 }
  0xf8   : > { %v496_v10 = vsub.f32 %v494_v8, %v495_v7 }
  0xfa   : > { %v505_v13 = vperm.slane %v496_v10, 0 }
 0x163   : > { %v465_v9 = vpop.f32.mrf.mxu0 }
 0x164   : > { %v500_v12 = vmul.f32 %v498_v11, %v465_v9 }
 0x166   : > { %v507_v15 = vadd.f32 %v505_v13, %v500_v12 }
 0x168   : > { %v511_v18 = vmax.f32 %v507_v15, 0.0 }
 0x16b   : > { %v467_v14 = vpop.f32.mrf.mxu0 }
 0x16c   : > { %v501_v16 = vmul.f32 %v498_v11, %v467_v14 }
 0x16e   : > { %v508_v17 = vadd.f32 %v505_v13, %v501_v16 }
 0x170   : > { %v512_v19 = vmax.f32 %v508_v17, 0.0 }
 0x172   : > { %v515_v20 = vpack.c.bf16 %v512_v19, %v511_v18 }
 0x173   : > { %v470_v21 = vpop.f32.mrf.mxu0 }
 0x174   : > { %589 = vmatmul.bf16.vlgmr.msra.gmra.mxu1 %v515_v20  ;;  %v502_v22 = vmul.f32 %v498_v11, %v470_v21 }
 0x176   : > { %v509_v24 = vadd.f32 %v505_v13, %v502_v22 }
 0x178   : > { %v513_v27 = vmax.f32 %v509_v24, 0.0 }
 0x17b   : > { %v472_v23 = vpop.f32.mrf.mxu0 }
 0x17c   : > { %v503_v25 = vmul.f32 %v498_v11, %v472_v23 }
 0x17e   : > { %v510_v26 = vadd.f32 %v505_v13, %v503_v25 }
 0x180   : > { %v514_v28 = vmax.f32 %v510_v26, 0.0 }
 0x182   : > { %v516_v29 = vpack.c.bf16 %v514_v28, %v513_v27 }
 0x184   : > { %594 = vmatmul.bf16.vlgmr.msra.gmra.mxu2 %v516_v29 }
 0x1f1   : > { %v590_v30 = vpop.f32.mrf.mxu1 }
 0x1f2   : > { %v613_v34 = vmul.f32 %v590_v30, %v590_v30 }
 0x1f9   : > { %v592_v31 = vpop.f32.mrf.mxu1 }
 0x1fa   : > { %v614_v33 = vmul.f32 %v592_v31, %v592_v31  ;;  %v601_v35 = vadd.f32 %v592_v31, %v590_v30 }
 0x1fc   : > { %v617_v37 = vadd.f32 %v614_v33, %v613_v34 }
 0x207   : > { %v595_v32 = vpop.f32.mrf.mxu2 }
 0x208   : > { %v615_v36 = vmul.f32 %v595_v32, %v595_v32  ;;  %v602_v38 = vadd.f32 %v601_v35, %v595_v32 }
 0x20a   : > { %v618_v40 = vadd.f32 %v617_v37, %v615_v36 }
 0x20f   : > { %v597_v39 = vpop.f32.mrf.mxu2 }
 0x210   : > { %v603_v41 = vadd.f32 %v602_v38, %v597_v39  ;;  %v616_v42 = vmul.f32 %v597_v39, %v597_v39 }
 0x212   : > { %v604_v43 = vrot.slane %v603_v41, 4  ;;  %v619_v44 = vadd.f32 %v618_v40, %v616_v42 }
 0x214   : > { %v605_v45 = vadd.f32 %v604_v43, %v603_v41  ;;  %v620_v46 = vrot.slane %v619_v44, 4 }
 0x216   : > { %v606_v47 = vrot.slane %v605_v45, 2  ;;  %v621_v48 = vadd.f32 %v620_v46, %v619_v44 }
 0x218   : > { %v607_v49 = vadd.f32 %v606_v47, %v605_v45  ;;  %v622_v50 = vrot.slane %v621_v48, 2 }
 0x21a   : > { %v608_v51 = vrot.slane %v607_v49, 1  ;;  %v623_v52 = vadd.f32 %v622_v50, %v621_v48 }
 0x21c   : > { %v609_v54 = vadd.f32 %v608_v51, %v607_v49  ;;  %v624_v55 = vrot.slane %v623_v52, 1 }
 0x21e   : > { %v610_v57 = vadd.f32 %v609_v54, %v600_v53  ;;  %v625_v58 = vadd.f32 %v624_v55, %v623_v52 }
 0x220   : > { %611 = vst [vmem:[#allocation2 + $0x2] sm:$0x1] %v610_v57  ;;  %v626_v59 = vadd.f32 %v625_v58, %v612_v56 }
 0x222   : > { %627 = vst [vmem:[#allocation2 + $0x3] sm:$0x1] %v626_v59 }
 0x223 PF: > { %p1018_p13 = scmp.ne.s32.totalorder %s1191_s25, 2 }
 0x225   : > { %631 = sbr.rel (%p1018_p13) target bundleno = 876 (0x36c), region = 64 }
 0x22a   : > { %v640_v60 = vld [vmem:[%s1412_s1 + $0x10] sm:$0x3]  ;;  %v1098_v62 = vld [vmem:[%s1415_s4 + $0x38] sm:$0xff]  ;;  %vm673_vm7 = vcmask 1041408   ;;  %v1090_v2 = vld [vmem:[%s1412_s1 + $0x8] sm:$0xff]  ;;  %vm666_vm8 = vcmask 293888  }
 0x22b   : > { %v660_v61 = vunpack.c.l.b16 %v640_v60  ;;  %802 = vmatpush.bf16.msra.mxu1 %v1098_v62  ;;  %v1097_v0 = vld [vmem:[%s1415_s4 + $0x30] sm:$0xff]  ;;  %1110 = vmatpush.bf16.msra.mxu2 %v1098_v62  ;;  %v1096_v3 = vld [vmem:[%s1415_s4 + $0x28] sm:$0xff]  ;;  %v1089_v4 = vld [vmem:[%s1412_s1] sm:$0xff] }
 0x22c   : > { %v1095_v5 = vld [vmem:[%s1415_s4 + $0x20] sm:$0xff]  ;;  %v1088_v7 = vld [vmem:[%s1283_s14 + $0x8] sm:$0xff]  ;;  %v1094_v16 = vld [vmem:[%s1415_s4 + $0x18] sm:$0xff] }
 0x22d   : > { %v663_v63 = vpack.c.b16 %v660_v61, %v660_v61  ;;  %v1087_v6 = vld [vmem:[%s1283_s14] sm:$0xff]  ;;  %v1093_v18 = vld [vmem:[%s1415_s4 + $0x10] sm:$0xff]  ;;  %v1092_v20 = vld [vmem:[%s1415_s4 + $0x8] sm:$0xff] }
 0x22e   : > { %v696_v8 = vld [vmem:[#allocation2] sm:$0x1]  ;;  %v698_v10 = vld [vmem:[#allocation2 + $0x1] sm:$0x1]  ;;  %v821_v51 = vld [vmem:[#allocation2 + $0x2] sm:$0x1] }
 0x22f   : > { %v675_v1 = vsel %vm673_vm7, %v663_v63, 0  ;;  %803 = vmatpush.bf16.msra.mxu1 %v1097_v0  ;;  %1111 = vmatpush.bf16.msra.mxu2 %v1097_v0  ;;  %v697_v9 = vmul.f32 0.0078125, %v696_v8  ;;  %v699_v11 = vmul.f32 0.0078125, %v698_v10  ;;  %v1091_v22 = vld [vmem:[%s1415_s4] sm:$0xff]  ;;  %v822_v52 = vmul.f32 0.0078125, %v821_v51 }
 0x230   : > { %682 = vmatpush.bf16.msra.mxu0 %v675_v1  ;;  %v702_v25 = vld [vmem:[%s1413_s2] sm:$0x1]  ;;  %v823_v53 = vld [vmem:[#allocation2 + $0x3] sm:$0x1] }
 0x231   : > { %v700_v12 = vmul.f32 %v697_v9, %v697_v9  ;;  %v715_v29 = vld [vmem:[%s1414_s3] sm:$0x1]  ;;  %v824_v54 = vmul.f32 0.0078125, %v823_v53  ;;  %v825_v55 = vmul.f32 %v822_v52, %v822_v52 }
 0x232   : > { %v827_v0 = vld [vmem:[%s1416_s5] sm:$0x1] }
 0x233   : > { %804 = vmatpush.bf16.msra.mxu1 %v1096_v3  ;;  %1112 = vmatpush.bf16.msra.mxu2 %v1096_v3  ;;  %v701_v13 = vsub.f32 %v699_v11, %v700_v12  ;;  %v826_v56 = vsub.f32 %v824_v54, %v825_v55 }
 0x234   : > { %683 = vmatpush.bf16.msra.mxu0 %v1090_v2 }
 0x235   : > { %v703_v14 = vadd.f32 1e-05, %v701_v13  ;;  %v828_v57 = vadd.f32 1e-05, %v826_v56 }
 0x237   : > { %805 = vmatpush.bf16.msra.mxu1 %v1095_v5  ;;  %1113 = vmatpush.bf16.msra.mxu2 %v1095_v5  ;;  %1161 = vrsqrt.f32 %v703_v14  ;;  %vm710_vm9 = vweird.f32 %v703_v14  ;;  %vm835_vm12 = vweird.f32 %v828_v57 }
 0x238   : > { %684 = vmatpush.bf16.msra.mxu0 %v1089_v4  ;;  %1163 = vrsqrt.f32 %v828_v57  ;;  %v840_v4 = vld [vmem:[%s1417_s6] sm:$0x1] }
 0x23b   : > { %1035 = vmatmul.msk.bf16.vlgmr.msra.gmra.mxu0 %vm666_vm8, %v1087_v6  ;;  %806 = vmatpush.bf16.msra.mxu1 %v1094_v16 }
 0x23c   : > { %1114 = vmatpush.bf16.msra.mxu2 %v1094_v16 }
 0x23d   : > { %v1162_v15 = vpop.eup %1161 }
 0x23e   : > { %v705_v17 = vmul.f32 %v1162_v15, %v703_v14  ;;  %vm711_vm10 = vweird.f32 %v1162_v15  ;;  %v1164_v58 = vpop.eup %1163 }
 0x23f   : > { %807 = vmatpush.bf16.msra.mxu1 %v1093_v18  ;;  %vm712_vm11 = vmor %vm710_vm9, %vm711_vm10  ;;  %v830_v59 = vmul.f32 %v1164_v58, %v828_v57  ;;  %vm836_vm13 = vweird.f32 %v1164_v58 }
 0x240   : > { %v706_v19 = vmul.f32 %v1162_v15, %v705_v17  ;;  %1115 = vmatpush.bf16.msra.mxu2 %v1093_v18  ;;  %vm837_vm14 = vmor %vm835_vm12, %vm836_vm13 }
 0x241   : > { %v831_v60 = vmul.f32 %v1164_v58, %v830_v59 }
 0x242   : > { %v707_v21 = vmul.f32 0.5, %v706_v19 }
 0x243   : > { %808 = vmatpush.bf16.msra.mxu1 %v1092_v20  ;;  %v832_v61 = vmul.f32 0.5, %v831_v60 }
 0x244   : > { %1116 = vmatpush.bf16.msra.mxu2 %v1092_v20  ;;  %v708_v23 = vsub.f32 1.5, %v707_v21 }
 0x245   : > { %v833_v62 = vsub.f32 1.5, %v832_v61 }
 0x246   : > { %v709_v24 = vmul.f32 %v1162_v15, %v708_v23 }
 0x247   : > { %809 = vmatpush.bf16.msra.mxu1 %v1091_v22  ;;  %v834_v63 = vmul.f32 %v1164_v58, %v833_v62 }
 0x248   : > { %1117 = vmatpush.bf16.msra.mxu2 %v1091_v22  ;;  %v713_v26 = vsel %vm712_vm11, %v1162_v15, %v709_v24 }
 0x249   : > { %v714_v27 = vmul.f32 %v713_v26, %v702_v25  ;;  %v838_v1 = vsel %vm837_vm14, %v1164_v58, %v834_v63 }
 0x24a   : > { %v839_v2 = vmul.f32 %v838_v1, %v827_v0 }
 0x24b   : > { %1036 = vmatmul.msk.bf16.gmra.mxu0 %vm666_vm8, %v1088_v7  ;;  %v716_v28 = vmul.f32 %v714_v27, %v697_v9  ;;  %v719_v32 = vperm.slane %v714_v27, 0 }
 0x24c   : > { %v841_v3 = vmul.f32 %v839_v2, %v822_v52  ;;  %v844_v6 = vperm.slane %v839_v2, 0 }
 0x24d   : > { %v717_v31 = vsub.f32 %v715_v29, %v716_v28 }
 0x24e   : > { %v842_v5 = vsub.f32 %v840_v4, %v841_v3 }
 0x24f   : > { %v726_v34 = vperm.slane %v717_v31, 0 }
 0x250   : > { %v851_v7 = vperm.slane %v842_v5, 0 }
 0x2b8   : > { %v686_v30 = vpop.f32.mrf.mxu0 }
 0x2b9   : > { %v721_v33 = vmul.f32 %v719_v32, %v686_v30 }
 0x2bb   : > { %v728_v36 = vadd.f32 %v726_v34, %v721_v33 }
 0x2bd   : > { %v732_v39 = vmax.f32 %v728_v36, 0.0 }
 0x2c0   : > { %v688_v35 = vpop.f32.mrf.mxu0 }
 0x2c1   : > { %v722_v37 = vmul.f32 %v719_v32, %v688_v35 }
 0x2c3   : > { %v729_v38 = vadd.f32 %v726_v34, %v722_v37 }
 0x2c5   : > { %v733_v40 = vmax.f32 %v729_v38, 0.0 }
 0x2c7   : > { %v736_v41 = vpack.c.bf16 %v733_v40, %v732_v39 }
 0x2c8   : > { %v691_v42 = vpop.f32.mrf.mxu0 }
 0x2c9   : > { %810 = vmatmul.bf16.vlgmr.msra.gmra.mxu1 %v736_v41  ;;  %v723_v43 = vmul.f32 %v719_v32, %v691_v42 }
 0x2cb   : > { %v730_v45 = vadd.f32 %v726_v34, %v723_v43 }
 0x2cd   : > { %v734_v48 = vmax.f32 %v730_v45, 0.0 }
 0x2d0   : > { %v693_v44 = vpop.f32.mrf.mxu0 }
 0x2d1   : > { %v724_v46 = vmul.f32 %v719_v32, %v693_v44 }
 0x2d3   : > { %v731_v47 = vadd.f32 %v726_v34, %v724_v46 }
 0x2d5   : > { %v735_v49 = vmax.f32 %v731_v47, 0.0 }
 0x2d7   : > { %v737_v50 = vpack.c.bf16 %v735_v49, %v734_v48 }
 0x2d9   : > { %815 = vmatmul.bf16.vlgmr.msra.gmra.mxu2 %v737_v50 }
 0x346   : > { %v811_v8 = vpop.f32.mrf.mxu1 }
 0x347   : > { %v846_v9 = vmul.f32 %v844_v6, %v811_v8 }
 0x349   : > { %v853_v10 = vadd.f32 %v851_v7, %v846_v9 }
 0x34b   : > { %v857_v11 = vmax.f32 %v853_v10, 0.0 }
 0x34d   : > { %861 = vst [vmem:[%s1288_s18] sm:$0xff] %v857_v11 }
 0x34e   : > { %v813_v12 = vpop.f32.mrf.mxu1 }
 0x34f   : > { %v847_v13 = vmul.f32 %v844_v6, %v813_v12 }
 0x351   : > { %v854_v14 = vadd.f32 %v851_v7, %v847_v13 }
 0x353   : > { %v858_v15 = vmax.f32 %v854_v14, 0.0 }
 0x355   : > { %862 = vst [vmem:[%s1288_s18 + $0x8] sm:$0xff] %v858_v15 }
 0x35c   : > { %v816_v16 = vpop.f32.mrf.mxu2 }
 0x35d   : > { %v848_v17 = vmul.f32 %v844_v6, %v816_v16 }
 0x35f   : > { %v855_v18 = vadd.f32 %v851_v7, %v848_v17 }
 0x361   : > { %v859_v19 = vmax.f32 %v855_v18, 0.0 }
 0x363   : > { %863 = vst [vmem:[%s1288_s18 + $0x10] sm:$0xff] %v859_v19 }
 0x364   : > { %v818_v20 = vpop.f32.mrf.mxu2 }
 0x365   : > { %v849_v21 = vmul.f32 %v844_v6, %v818_v20 }
 0x367   : > { %v856_v22 = vadd.f32 %v851_v7, %v849_v21 }
 0x369   : > { %v860_v23 = vmax.f32 %v856_v22, 0.0 }
 0x36b   : > { %864 = vst [vmem:[%s1288_s18 + $0x18] sm:$0xff] %v860_v23 }
 0x36c PF: > { %s17_s28 = sadd.s32 1, %s1203_s28   ;;  %s1419_s24 = smov %s1195_s26 }
 0x36d   : > { %p14_p0 = scmp.ge.s32.totalorder %s17_s28, 14   ;;  %s1420_s25 = smov %s1199_s27 }
 0x36e   : > { %s1421_s26 = smov %s1424_s29  ;;  %s1422_s27 = smov %s1428_s30 }
 0x36f   :  { %16 = sbr.rel (!%p14_p0) target bundleno = 3 (0x3), region = 94 }

</bundles_post_ra>
